<compile_context>
chip_gen: v5e
topology: v5e:2x2
jax: 0.10.0
libtpu: 0.0.40
codegen_flags: <defaults>
</compile_context>

<pallas_src>
import jax
import jax.numpy as jnp
from jax import lax
from jax.experimental import pallas as pl
from jax.experimental.pallas import tpu as pltpu


# Bound on the rows of the (rows, 1) MXU row-sum intermediate: its layout is
# lane-sparse (1 useful lane per vreg), so keep it to a couple of MiB.
_MXU_MAX_SKINNY_ROWS = 8192


# --------------------------------------------------------------------------
# In-kernel reduction helpers
# --------------------------------------------------------------------------

def _row_sums_lane(x):
    """row[g, i] = sum_j x[g, i, j], returned as (tg, 1, L) float32, i on lanes."""
    tg, L, _ = x.shape
    if x.dtype == jnp.bfloat16 and L % 8 == 0:
        # MXU route: one extended-slot push per input vreg, f32 accumulation,
        # no stored f32 copy of the block.  The (tg*L, 1) -> (tg, 1, L)
        # reshape is an output-sized (1/L of input) relayout.
        x2 = x.reshape(tg * L, L)                      # leading collapse (free, L % 8 == 0)
        ones = jnp.ones((L, 1), dtype=x.dtype)
        row = lax.dot_general(x2, ones, (((1,), (0,)), ((), ())),
                              preferred_element_type=jnp.float32)   # (tg*L, 1)
        return row.reshape(tg, 1, L)
    # TODO(synk): MXU route for f32 / L % 8 != 0; keep exact lane reduction.
    return jnp.sum(x, axis=2, dtype=jnp.float32)[:, None, :]


def _row_sums_tile(x):
    """Row sums of a (tl, L) tile as (tl, 1) float32 (sublane oriented)."""
    if x.dtype == jnp.bfloat16:
        ones = jnp.ones((x.shape[1], 1), dtype=x.dtype)
        return lax.dot_general(x, ones, (((1,), (0,)), ((), ())),
                               preferred_element_type=jnp.float32)
    return jnp.sum(x, axis=1, keepdims=True, dtype=jnp.float32)


def _col_sums(x):
    """col[g, j] = sum_i x[g, i, j] as (tg, 1, L) float32 (sublane reduce, VPU)."""
    return jnp.sum(x, axis=1, keepdims=True, dtype=jnp.float32)


# --------------------------------------------------------------------------
# Kernels: full-map path (per-map L*L slab fits the block budget)
# --------------------------------------------------------------------------

def _sum_full_kernel(x_ref, o_ref):
    # x_ref: (tg, L, L) ; o_ref: (tg, 1, L)
    x = x_ref[...]
    o_ref[...] = (_row_sums_lane(x) + _col_sums(x)).astype(o_ref.dtype)


def _cat_full_kernel(x_ref, row_ref, col_ref):
    # x_ref: (tg, L, L) ; row_ref/col_ref: (tg, 1, L)
    x = x_ref[...]
    row_ref[...] = _row_sums_lane(x).astype(row_ref.dtype)
    col_ref[...] = _col_sums(x).astype(col_ref.dtype)


# --------------------------------------------------------------------------
# Kernels: row-tiled path (large L); grid (G, nr), reduction axis last
# --------------------------------------------------------------------------

def _sum_tiled_kernel(x_ref, o_ref, rowacc_ref, colacc_ref):
    # x_ref: (1, tl, L); o_ref: (1, 1, L)
    # rowacc_ref: VMEM (L, 1) f32 ; colacc_ref: VMEM (1, L) f32
    r = pl.program_id(1)
    nr = pl.num_programs(1)
    tl = x_ref.shape[1]

    @pl.when(r == 0)
    def _init():
        colacc_ref[...] = jnp.zeros_like(colacc_ref)

    x = x_ref[0]                                          # (tl, L)
    align = 128 if tl % 128 == 0 else 8
    start = pl.multiple_of(r * tl, align)
    rowacc_ref[pl.ds(start, tl), :] = _row_sums_tile(x)   # complete for this tile
    colacc_ref[...] += jnp.sum(x, axis=0, keepdims=True, dtype=jnp.float32)

    @pl.when(r == nr - 1)
    def _finalize():
        L = colacc_ref.shape[1]
        row = rowacc_ref[...].reshape(1, L)               # small sublane->lane relayout
        o_ref[0] = (row + colacc_ref[...]).astype(o_ref.dtype)


def _cat_tiled_kernel(x_ref, row_ref, col_ref, rowacc_ref, colacc_ref):
    # x_ref: (1, tl, L); row_ref/col_ref: (1, 1, L); scratches as above.
    r = pl.program_id(1)
    nr = pl.num_programs(1)
    tl = x_ref.shape[1]

    @pl.when(r == 0)
    def _init():
        colacc_ref[...] = jnp.zeros_like(colacc_ref)

    x = x_ref[0]
    align = 128 if tl % 128 == 0 else 8
    start = pl.multiple_of(r * tl, align)
    rowacc_ref[pl.ds(start, tl), :] = _row_sums_tile(x)
    colacc_ref[...] += jnp.sum(x, axis=0, keepdims=True, dtype=jnp.float32)

    @pl.when(r == nr - 1)
    def _finalize():
        L = colacc_ref.shape[1]
        row_ref[0] = rowacc_ref[...].reshape(1, L).astype(row_ref.dtype)
        col_ref[0] = colacc_ref[...].astype(col_ref.dtype)


# --------------------------------------------------------------------------
# Tile / budget selection
# --------------------------------------------------------------------------

def _largest_divisor(n, cap, multiple=1):
    """Largest divisor of n that is <= cap and a multiple of `multiple`."""
    cap = int(min(n, max(1, cap)))
    for t in range(cap, 0, -1):
        if n % t == 0 and t % multiple == 0:
            return t
    return None


def _vmem_capacity_bytes():
    try:
        cap = int(getattr(pltpu.get_tpu_info(), "vmem_capacity_bytes", 0))
        if cap > 0:
            return max(cap, 32 << 20)
    except Exception:
        pass
    return 64 << 20        # conservative default (v7x per-TensorCore VMEM)


# --------------------------------------------------------------------------
# Wrapper
# --------------------------------------------------------------------------

def flatten2d(x, sum_row_col=True, *, max_block_bytes=None):
    """Pallas implementation of Flatten2D.forward for x of shape (B, C, L, L)."""
    if x.ndim != 4:
        raise ValueError(
            'Expected three dimensional shape, got shape {}'.format(x.shape))
    B, C, H, W = x.shape
    if H != W:
        raise ValueError(
            'Flatten2D expects square pairwise maps, got shape {}'.format(x.shape))
    L = H
    G = B * C
    itemsize = jnp.dtype(x.dtype).itemsize

    # Generation-aware VMEM budgeting.
    vmem_cap = _vmem_capacity_bytes()
    vmem_limit = int(min(vmem_cap - (8 << 20), 100 << 20))
    if max_block_bytes is None:
        # ~9.6 MiB blocks on v7x (64 MiB VMEM), 16 MiB on v5e/v6e (128 MiB):
        # leaves room for double-buffered inputs + f32 reduce intermediates.
        max_block_bytes = min(16 << 20, (vmem_cap - (16 << 20)) // 5)
    max_block_bytes = max(int(max_block_bytes), 1024)

    # VMEM-padded per-map footprint (lanes padded to 128, sublanes to 8).
    lanes = -(-L // 128) * 128
    per_map = (-(-L // 8) * 8) * lanes * itemsize

    xg = x.reshape(G, L, L)          # collapse B*C: free, better tiling granularity

    if per_map <= max_block_bytes or L % 8 != 0:
        # ---------------- full-map path: (tg, L, L) blocks -------------------
        # TODO(synk): for L % 8 != 0 with per-map footprint over budget (very
        # large, non-multiple-of-8 L) a masked ragged row tiling would bound
        # VMEM; here we keep the full (L, L) slab.
        cap_g = max(1, max_block_bytes // per_map)
        if x.dtype == jnp.bfloat16 and L % 8 == 0:
            cap_g = min(cap_g, max(1, _MXU_MAX_SKINNY_ROWS // L))
        tg = _largest_divisor(G, cap_g)
        grid = (G // tg,)
        in_specs = [pl.BlockSpec((tg, L, L), lambda g: (g, 0, 0))]
        out_block = pl.BlockSpec((tg, 1, L), lambda g: (g, 0, 0))
        cp = pltpu.CompilerParams(dimension_semantics=("parallel",),
                                  vmem_limit_bytes=vmem_limit)
        if sum_row_col:
            out = pl.pallas_call(
                _sum_full_kernel,
                out_shape=jax.ShapeDtypeStruct((G, 1, L), x.dtype),
                grid_spec=pltpu.PrefetchScalarGridSpec(
                    num_scalar_prefetch=0, grid=grid,
                    in_specs=in_specs, out_specs=out_block),
                compiler_params=cp,
            )(xg)
            return out.reshape(B, C, L)
        row_out, col_out = pl.pallas_call(
            _cat_full_kernel,
            out_shape=(jax.ShapeDtypeStruct((G, 1, L), x.dtype),
                       jax.ShapeDtypeStruct((G, 1, L), x.dtype)),
            grid_spec=pltpu.PrefetchScalarGridSpec(
                num_scalar_prefetch=0, grid=grid,
                in_specs=in_specs, out_specs=(out_block, out_block)),
            compiler_params=cp,
        )(xg)
        return jnp.concatenate([row_out.reshape(B, C, L),
                                col_out.reshape(B, C, L)], axis=1)

    # -------------------- row-tiled path (large L) ---------------------------
    row_bytes = lanes * itemsize
    cap_rows = max(8, max_block_bytes // row_bytes)
    tl = _largest_divisor(L, cap_rows, multiple=8)     # exists: L % 8 == 0 here
    nr = L // tl
    grid = (G, nr)
    in_specs = [pl.BlockSpec((1, tl, L), lambda g, r: (g, r, 0))]
    out_block = pl.BlockSpec((1, 1, L), lambda g, r: (g, 0, 0))
    scratch = [pltpu.VMEM((L, 1), jnp.float32),   # per-map row sums (sublane oriented)
               pltpu.VMEM((1, L), jnp.float32)]   # running col sums
    cp = pltpu.CompilerParams(dimension_semantics=("parallel", "arbitrary"),
                              vmem_limit_bytes=vmem_limit)
    if sum_row_col:
        out = pl.pallas_call(
            _sum_tiled_kernel,
            out_shape=jax.ShapeDtypeStruct((G, 1, L), x.dtype),
            grid_spec=pltpu.PrefetchScalarGridSpec(
                num_scalar_prefetch=0, grid=grid,
                in_specs=in_specs, out_specs=out_block,
                scratch_shapes=scratch),
            compiler_params=cp,
        )(xg)
        return out.reshape(B, C, L)
    row_out, col_out = pl.pallas_call(
        _cat_tiled_kernel,
        out_shape=(jax.ShapeDtypeStruct((G, 1, L), x.dtype),
                   jax.ShapeDtypeStruct((G, 1, L), x.dtype)),
        grid_spec=pltpu.PrefetchScalarGridSpec(
            num_scalar_prefetch=0, grid=grid,
            in_specs=in_specs, out_specs=(out_block, out_block),
            scratch_shapes=scratch),
        compiler_params=cp,
    )(xg)
    return jnp.concatenate([row_out.reshape(B, C, L),
                            col_out.reshape(B, C, L)], axis=1)


# --------------------------------------------------------------------------
# Self-test
# --------------------------------------------------------------------------

if __name__ == "__main__":
    key = jax.random.PRNGKey(0)
    k1, k2, k3 = jax.random.split(key, 3)

    # 1) f32, L multiple of 8 (exact lane-reduction path), full-map kernels.
    B, C, L = 2, 4, 16
    x = jax.random.normal(k1, (B, C, L, L), dtype=jnp.float32)
    ref_row = jnp.sum(x, axis=3)
    ref_col = jnp.sum(x, axis=2)
    out_sum = jax.block_until_ready(flatten2d(x, sum_row_col=True))
    assert out_sum.shape == (B, C, L)
    assert jnp.allclose(out_sum, ref_row + ref_col, atol=1e-4, rtol=1e-5)
    out_cat = jax.block_until_ready(flatten2d(x, sum_row_col=False))
    assert out_cat.shape == (B, 2 * C, L)
    assert jnp.allclose(out_cat, jnp.concatenate([ref_row, ref_col], axis=1),
                        atol=1e-4, rtol=1e-5)

    # 2) bf16 (MXU row-sum path), full-map kernels, sum and concat variants.
    xb = x.astype(jnp.bfloat16)
    xbf = xb.astype(jnp.float32)
    refb_sum = (jnp.sum(xbf, axis=3) + jnp.sum(xbf, axis=2)).astype(jnp.bfloat16)
    refb_cat = jnp.concatenate(
        [jnp.sum(xbf, axis=3), jnp.sum(xbf, axis=2)], axis=1).astype(jnp.bfloat16)
    outb_sum = jax.block_until_ready(flatten2d(xb, sum_row_col=True))
    outb_cat = jax.block_until_ready(flatten2d(xb, sum_row_col=False))
    assert jnp.allclose(outb_sum.astype(jnp.float32), refb_sum.astype(jnp.float32),
                        atol=1e-1, rtol=1e-2)
    assert jnp.allclose(outb_cat.astype(jnp.float32), refb_cat.astype(jnp.float32),
                        atol=1e-1, rtol=1e-2)

    # 3) L not a multiple of 8 (fallback lane reduction), f32.
    B3, C3, L3 = 2, 3, 12
    x3 = jax.random.normal(k2, (B3, C3, L3, L3), dtype=jnp.float32)
    ref3 = jnp.sum(x3, axis=3) + jnp.sum(x3, axis=2)
    out3 = jax.block_until_ready(flatten2d(x3, sum_row_col=True))
    assert out3.shape == (B3, C3, L3)
    assert jnp.allclose(out3, ref3, atol=1e-4, rtol=1e-5)

    # 4) Row-tiled accumulator path, forced via a tiny block budget.
    B4, C4, L4 = 2, 2, 64
    x4 = jax.random.normal(k3, (B4, C4, L4, L4), dtype=jnp.float32)
    r4row = jnp.sum(x4, axis=3)
    r4col = jnp.sum(x4, axis=2)
    o4s = jax.block_until_ready(
        flatten2d(x4, sum_row_col=True, max_block_bytes=8 * 1024))
    o4c = jax.block_until_ready(
        flatten2d(x4, sum_row_col=False, max_block_bytes=8 * 1024))
    assert o4s.shape == (B4, C4, L4)
    assert o4c.shape == (B4, 2 * C4, L4)
    assert jnp.allclose(o4s, r4row + r4col, atol=1e-4, rtol=1e-5)
    assert jnp.allclose(o4c, jnp.concatenate([r4row, r4col], axis=1),
                        atol=1e-4, rtol=1e-5)

    # 4b) Row-tiled path with bf16 (MXU per-tile row sums).
    x4b = x4.astype(jnp.bfloat16)
    x4bf = x4b.astype(jnp.float32)
    r4b = (jnp.sum(x4bf, axis=3) + jnp.sum(x4bf, axis=2)).astype(jnp.bfloat16)
    o4b = jax.block_until_ready(
        flatten2d(x4b, sum_row_col=True, max_block_bytes=8 * 1024))
    assert jnp.allclose(o4b.astype(jnp.float32), r4b.astype(jnp.float32),
                        atol=2e-1, rtol=2e-2)

    print("KERNEL_OK")
</pallas_src>

<mosaic_0001>
module attributes {stable_mosaic.version = 11 : i64} {
  func.func @_sum_full_kernel(%arg0: i32, %arg1: memref<8x16x16xf32, #tpu.memory_space<vmem>>, %arg2: memref<8x1x16xf32, #tpu.memory_space<vmem>>) attributes {dimension_semantics = [#tpu.dimension_semantics<parallel>], iteration_bounds = array<i64: 1>, scalar_prefetch = 0 : i64, scratch_operands = 0 : i64, tpu.core_type = #tpu.core_type<tc>, window_params = [{transform_indices = @transform_0, window_bounds = array<i64: 8, 16, 16>}, {transform_indices = @transform_1, window_bounds = array<i64: 8, 1, 16>}]} {
    %c0 = arith.constant 0 : index
    %c0_0 = arith.constant 0 : index
    %c0_1 = arith.constant 0 : index
    %0 = vector.load %arg1[%c0, %c0_0, %c0_1] : memref<8x16x16xf32, #tpu.memory_space<vmem>>, vector<8x16x16xf32>
    %cst = arith.constant dense<0.000000e+00> : vector<8x16xf32>
    %1 = vector.multi_reduction <add>, %0, %cst [2] : vector<8x16x16xf32> to vector<8x16xf32>
    %2 = vector.shape_cast %1 : vector<8x16xf32> to vector<8x1x16xf32>
    %cst_2 = arith.constant dense<0.000000e+00> : vector<8x16xf32>
    %3 = vector.multi_reduction <add>, %0, %cst_2 [1] : vector<8x16x16xf32> to vector<8x16xf32>
    %4 = vector.shape_cast %3 : vector<8x16xf32> to vector<8x1x16xf32>
    %5 = arith.addf %2, %4 : vector<8x1x16xf32>
    %c0_3 = arith.constant 0 : index
    %c0_4 = arith.constant 0 : index
    %c0_5 = arith.constant 0 : index
    %6 = vector.load %arg2[%c0_3, %c0_4, %c0_5] : memref<8x1x16xf32, #tpu.memory_space<vmem>>, vector<8x1x16xf32>
    tpu.vector_store %arg2[%c0_3, %c0_4, %c0_5], %5 {strides = array<i32>} : memref<8x1x16xf32, #tpu.memory_space<vmem>>, vector<8x1x16xf32>,
    return
  }
  func.func @transform_0(%arg0: i32) -> (i32, i32, i32) {
    %c0_i32 = arith.constant 0 : i32
    %c0_i32_0 = arith.constant 0 : i32
    %c0_i32_1 = arith.constant 0 : i32
    return %arg0, %c0_i32, %c0_i32_0 : i32, i32, i32
  }
  func.func @transform_1(%arg0: i32) -> (i32, i32, i32) {
    %c0_i32 = arith.constant 0 : i32
    %c0_i32_0 = arith.constant 0 : i32
    %c0_i32_1 = arith.constant 0 : i32
    return %arg0, %c0_i32, %c0_i32_0 : i32, i32, i32
  }
}

</mosaic_0001>

<bundles_post_ra>
// kernel: tpu_custom_call.1
= control target key start
LH: loop header
LB: loop body
LE: loop exit
PB: predicated region body
PF: predicated region fallthrough
CT: control target
= control target key end

     0   :  { %6 = vsyncpa [#allocation3], 0  ;;  %s548_s0 = inlined_call_operand.hbm [shape: f32[8,16,16], index: 0, kind: input, shape index: {}]   ;;  %s549_s1 = inlined_call_operand.hbm [shape: f32[8,1,16], index: 1, kind: output, shape index: {}]  }
   0x1   :  { %7 = vsyncpa [#allocation4], 0  ;;  %s12_s8 = sshll.u32 %s548_s0, 4  ;;  %s479_s9 = smov [#allocation2]   ;;  %s13_s8 = int_to_ptr.hbm [resolvable:$true] %s12_s8 }
   0x2   :  { %s14_s10 = sshll.u32 %s479_s9, 4  ;;  %s480_s11 = smov 128   ;;  %s15_s10 = int_to_ptr.vmem [resolvable:$true] %s14_s10 }
   0x3   :  { %s481_s12 = smov 8  }
   0x4   :  { %20 = dma.hbm_to_vmem [thread:$0]  %s13_s8, 2048, %s15_s10, [#allocation3], %s480_s11, %s480_s11, %s481_s12  }
   0x5   :  { %475 = dma.done.wait [#allocation3], 2048  }
   0x6   :  { %476 = vsyncadd [#allocation3], 4294965248  ;;  %vm41_vm0 = vcmask 130048   ;;  %v29_v0 = vld [vmem:[#allocation2 + $0x20] sm:$0xff]  ;;  %v27_v1 = vld [vmem:[#allocation2 + $0x10] sm:$0xff]  ;;  %v154_v15 = vlaneseq  ;;  %vm351_vm1 = vcmask 130112  }
   0x7   :  { %v25_v2 = vld [vmem:[#allocation2] sm:$0xff]  ;;  %v54_v3 = vsel %vm41_vm0, %v29_v0, 0.0  ;;  %v48_v4 = vsel %vm41_vm0, %v27_v1, 0.0  ;;  %v30_v6 = vld [vmem:[#allocation2 + $0x28] sm:$0xff]  ;;  %v28_v7 = vld [vmem:[#allocation2 + $0x18] sm:$0xff]  ;;  %vm382_vm2 = vcmask 122880  }
   0x8   :  { %v42_v5 = vsel %vm41_vm0, %v25_v2, 0.0  ;;  %55 = vadd.xlane.f32.xlu2 %v54_v3  ;;  %49 = vadd.xlane.f32.xlu1 %v48_v4  ;;  %v26_v8 = vld [vmem:[#allocation2 + $0x8] sm:$0xff]  ;;  %v57_v9 = vsel %vm41_vm0, %v30_v6, 0.0  ;;  %v51_v10 = vsel %vm41_vm0, %v28_v7, 0.0  ;;  %v33_v12 = vld [vmem:[#allocation2 + $0x40] sm:$0xff]  ;;  %v32_v13 = vld [vmem:[#allocation2 + $0x38] sm:$0xff] }
   0x9   :  { %43 = vadd.xlane.f32.xlu0 %v42_v5  ;;  %v45_v11 = vsel %vm41_vm0, %v26_v8, 0.0  ;;  %v31_v14 = vld [vmem:[#allocation2 + $0x30] sm:$0xff]  ;;  %v66_v16 = vsel %vm41_vm0, %v33_v12, 0.0  ;;  %v63_v17 = vsel %vm41_vm0, %v32_v13, 0.0  ;;  %v508_v18 = vshrl.u32 %v154_v15, 7  ;;  %v36_v21 = vld [vmem:[#allocation2 + $0x58] sm:$0xff] }
   0xa   :  { %v60_v19 = vsel %vm41_vm0, %v31_v14, 0.0  ;;  %v35_v22 = vld [vmem:[#allocation2 + $0x50] sm:$0xff]  ;;  %v34_v23 = vld [vmem:[#allocation2 + $0x48] sm:$0xff]  ;;  %v75_v24 = vsel %vm41_vm0, %v36_v21, 0.0  ;;  %v37_v29 = vld [vmem:[#allocation2 + $0x60] sm:$0xff]  ;;  %v90_v30 = vadd.f32 %v45_v11, %v42_v5  ;;  %v97_v37 = vadd.f32 %v51_v10, %v48_v4  ;;  %s483_s0 = smov [#allocation5]  }
   0xb   :  { %v512_v20 = vadd.s32 8, %v508_v18  ;;  %417 = vset.pattern.permute.xlu1 %v508_v18  ;;  %v72_v25 = vsel %vm41_vm0, %v35_v22, 0.0  ;;  %v69_v26 = vsel %vm41_vm0, %v34_v23, 0.0  ;;  %v39_v27 = vld [vmem:[#allocation2 + $0x70] sm:$0xff]  ;;  %v38_v28 = vld [vmem:[#allocation2 + $0x68] sm:$0xff]  ;;  %v78_v33 = vsel %vm41_vm0, %v37_v29, 0.0 }
   0xc   :  { %v84_v31 = vsel %vm41_vm0, %v39_v27, 0.0  ;;  %v81_v32 = vsel %vm41_vm0, %v38_v28, 0.0  ;;  %v91_v34 = vrot.slane %v90_v30, 4  ;;  %v118_v35 = vadd.f32 %v69_v26, %v66_v16  ;;  %v40_v36 = vld [vmem:[#allocation2 + $0x78] sm:$0xff]  ;;  %s395_s13 = sshll.u32 %s483_s0, 4  ;;  %s397_s16 = sshll.u32 %s549_s1, 4  ;;  %s396_s13 = int_to_ptr.vmem [resolvable:$true] %s395_s13  ;;  %s398_s16 = int_to_ptr.hbm [resolvable:$true] %s397_s16 }
   0xd   :  { %418 = vset.pattern.permute.xlu2 %v512_v20  ;;  %419 = vset.pattern.permute.xlu0 %v512_v20  ;;  %v104_v39 = vadd.f32 %v57_v9, %v54_v3  ;;  %v87_v41 = vsel %vm41_vm0, %v40_v36, 0.0  ;;  %v98_v42 = vrot.slane %v97_v37, 4  ;;  %v111_v49 = vadd.f32 %v63_v17, %v60_v19  ;;  %s484_s17 = smov 16   ;;  %s485_s18 = smov 1  }
   0xe   :  { %v92_v38 = vadd.f32 %v91_v34, %v90_v30  ;;  %v119_v40 = vrot.slane %v118_v35, 4  ;;  %v139_v63 = vadd.f32 %v87_v41, %v84_v31  ;;  %v125_v8 = vadd.f32 %v75_v24, %v72_v25 }
   0xf   :  { %v105_v44 = vrot.slane %v104_v39, 4  ;;  %v99_v46 = vadd.f32 %v98_v42, %v97_v37  ;;  %v112_v54 = vrot.slane %v111_v49, 4  ;;  %v132_v14 = vadd.f32 %v81_v32, %v78_v33 }
  0x10   :  { %58 = vadd.xlane.f32.xlu2 %v57_v9  ;;  %52 = vadd.xlane.f32.xlu1 %v51_v10  ;;  %v93_v43 = vrot.slane %v92_v38, 2  ;;  %v120_v45 = vadd.f32 %v119_v40, %v118_v35  ;;  %v140_v4 = vrot.slane %v139_v63, 4  ;;  %v482_v34 = vmov 0  }
  0x11   :  { %46 = vadd.xlane.f32.xlu0 %v45_v11  ;;  %v106_v48 = vadd.f32 %v105_v44, %v104_v39  ;;  %v100_v51 = vrot.slane %v99_v46, 2  ;;  %v113_v59 = vadd.f32 %v112_v54, %v111_v49  ;;  %v126_v11 = vrot.slane %v125_v8, 4 }
  0x12   :  { %v94_v47 = vadd.f32 %v93_v43, %v92_v38  ;;  %v121_v50 = vrot.slane %v120_v45, 2  ;;  %v141_v6 = vadd.f32 %v140_v4, %v139_v63 }
  0x13   :  { %v107_v53 = vrot.slane %v106_v48, 2  ;;  %v101_v56 = vadd.f32 %v100_v51, %v99_v46  ;;  %v114_v62 = vrot.slane %v113_v59, 2  ;;  %v127_v13 = vadd.f32 %v126_v11, %v125_v8 }
  0x14   :  { %v95_v52 = vrot.slane %v94_v47, 1  ;;  %v122_v55 = vadd.f32 %v121_v50, %v120_v45  ;;  %v142_v9 = vrot.slane %v141_v6, 2 }
  0x15   :  { %v108_v58 = vadd.f32 %v107_v53, %v106_v48  ;;  %v102_v61 = vrot.slane %v101_v56, 1  ;;  %v115_v3 = vadd.f32 %v114_v62, %v113_v59 }
  0x16   :  { %v96_v57 = vadd.f32 %v95_v52, %v94_v47  ;;  %v123_v60 = vrot.slane %v122_v55, 1  ;;  %v143_v12 = vadd.f32 %v142_v9, %v141_v6 }
  0x17   :  { %v109_v1 = vrot.slane %v108_v58, 1  ;;  %v103_v2 = vadd.f32 %v102_v61, %v101_v56  ;;  %v116_v7 = vrot.slane %v115_v3, 1 }
  0x18   :  { %67 = vadd.xlane.f32.xlu2 %v66_v16  ;;  %64 = vadd.xlane.f32.xlu1 %v63_v17  ;;  %v124_v0 = vadd.f32 %v123_v60, %v122_v55  ;;  %v144_v16 = vrot.slane %v143_v12, 1  ;;  %v128_v17 = vrot.slane %v127_v13, 2 }
  0x19   :  { %61 = vadd.xlane.f32.xlu0 %v60_v19  ;;  %v110_v5 = vadd.f32 %v109_v1, %v108_v58  ;;  %v117_v10 = vadd.f32 %v116_v7, %v115_v3  ;;  %v133_v19 = vrot.slane %v132_v14, 4 }
  0x1a   :  { %v145_v21 = vadd.f32 %v144_v16, %v143_v12  ;;  %v129_v22 = vadd.f32 %v128_v17, %v127_v13  ;;  %v347_v13 = vand.u32 127, %v154_v15 }
  0x1b   :  { %v134_v23 = vadd.f32 %v133_v19, %v132_v14 }
  0x1c   :  { %v349_v16 = vadd.s32 4294967288, %v347_v13 }
  0x20   :  { %76 = vadd.xlane.f32.xlu2 %v75_v24  ;;  %73 = vadd.xlane.f32.xlu1 %v72_v25  ;;  %v135_v24 = vrot.slane %v134_v23, 2  ;;  %v130_v25 = vrot.slane %v129_v22, 1 }
  0x21   :  { %70 = vadd.xlane.f32.xlu0 %v69_v26 }
  0x22   :  { %v136_v26 = vadd.f32 %v135_v24, %v134_v23  ;;  %v131_v27 = vadd.f32 %v130_v25, %v129_v22 }
  0x24   :  { %v137_v28 = vrot.slane %v136_v26, 1 }
  0x26   :  { %v138_v29 = vadd.f32 %v137_v28, %v136_v26 }
  0x28   :  { %85 = vadd.xlane.f32.xlu2 %v84_v31  ;;  %82 = vadd.xlane.f32.xlu1 %v81_v32 }
  0x29   :  { %79 = vadd.xlane.f32.xlu0 %v78_v33 }
  0x31   :  { %88 = vadd.xlane.f32.xlu0 %v87_v41 }
  0x40   :  { %164 = vperm.xlu2 %418, %v96_v57  }
  0x41   :  { %158 = vperm.xlu1 %417, %v96_v57  }
  0x45   :  { %212 = vperm.xlu0 %419, %v124_v0  }
  0x48   :  { %176 = vperm.xlu2 %418, %v103_v2  }
  0x49   :  { %182 = vperm.xlu1 %417, %v110_v5  }
  0x4d   :  { %420 = vset.pattern.permute.xlu0 %v508_v18 }
  0x50   :  { %188 = vperm.xlu2 %418, %v110_v5  }
  0x51   :  { %194 = vperm.xlu1 %417, %v117_v10  }
  0x55   :  { %170 = vperm.xlu0 %420, %v103_v2  }
  0x58   :  { %200 = vperm.xlu2 %418, %v117_v10  }
  0x59   :  { %206 = vperm.xlu1 %417, %v124_v0  }
  0x5d   :  { %242 = vperm.xlu0 %420, %v145_v21  }
  0x60   :  { %421 = vset.pattern.permute.xlu2 %v508_v18 }
  0x61   :  { %422 = vset.pattern.permute.xlu1 %v512_v20 }
  0x65   :  { %426 = vset.pattern.permute.xlu0 %v482_v34 }
  0x68   :  { %218 = vperm.xlu2 %421, %v131_v27  }
  0x69   :  { %224 = vperm.xlu1 %422, %v131_v27  }
  0x70   :  { %230 = vperm.xlu2 %421, %v138_v29  }
  0x71   :  { %236 = vperm.xlu1 %422, %v138_v29  }
  0x78   :  { %423 = vset.pattern.permute.xlu2 %v512_v20 }
  0x79   :  { %424 = vset.pattern.permute.xlu1 %v482_v34 }
  0x7b   :  { %v56_v30 = vpop.xlane.xlu2 %55  ;;  %v50_v31 = vpop.xlane.xlu1 %49 }
  0x7c   :  { %v44_v33 = vpop.xlane.xlu0 %43 }
  0x80   :  { %248 = vperm.xlu2 %423, %v145_v21  }
  0x83   :  { %v59_v32 = vpop.xlane.xlu2 %58  ;;  %v53_v35 = vpop.xlane.xlu1 %52 }
  0x84   :  { %v47_v36 = vpop.xlane.xlu0 %46 }
  0x88   :  { %425 = vset.pattern.permute.xlu2 %v482_v34 }
  0x8b   :  { %v68_v18 = vpop.xlane.xlu2 %67  ;;  %v65_v38 = vpop.xlane.xlu1 %64 }
  0x8c   :  { %v62_v39 = vpop.xlane.xlu0 %61 }
  0x93   :  { %v77_v37 = vpop.xlane.xlu2 %76  ;;  %v74_v41 = vpop.xlane.xlu1 %73 }
  0x94   :  { %v71_v42 = vpop.xlane.xlu0 %70 }
  0x9b   :  { %v86_v40 = vpop.xlane.xlu2 %85  ;;  %v83_v44 = vpop.xlane.xlu1 %82 }
  0x9c   :  { %v80_v47 = vpop.xlane.xlu0 %79 }
  0xa3   :  { %v165_v43 = vpop.permute.xlu2 %164 }
  0xa4   :  { %v267_v20 = vadd.f32 %v165_v43, %v47_v36  ;;  %v89_v51 = vpop.xlane.xlu0 %88 }
  0xa6   :  { %302 = vperm.xlu2 %425, %v267_v20  }
  0xab   :  { %v177_v45 = vpop.permute.xlu2 %176 }
  0xac   :  { %v269_v46 = vadd.f32 %v177_v45, %v53_v35 }
  0xae   :  { %308 = vperm.xlu0 %426, %v269_v46  }
  0xb3   :  { %v189_v48 = vpop.permute.xlu2 %188  ;;  %v159_v49 = vpop.permute.xlu1 %158 }
  0xb4   :  { %v266_v50 = vadd.f32 %v159_v49, %v44_v33  ;;  %v271_v0 = vadd.f32 %v189_v48, %v59_v32 }
  0xb6   :  { %299 = vperm.xlu1 %424, %v266_v50  }
  0xb7   :  { %v213_v55 = vpop.permute.xlu0 %212 }
  0xb8   :  { %v275_v62 = vadd.f32 %v213_v55, %v71_v42 }
  0xbb   :  { %v183_v52 = vpop.permute.xlu1 %182  ;;  %v201_v54 = vpop.permute.xlu2 %200 }
  0xbc   :  { %v270_v53 = vadd.f32 %v183_v52, %v56_v30  ;;  %v273_v3 = vadd.f32 %v201_v54, %v65_v38 }
  0xbe   :  { %311 = vperm.xlu2 %425, %v270_v53  }
  0xc3   :  { %v195_v56 = vpop.permute.xlu1 %194  ;;  %v219_v58 = vpop.permute.xlu2 %218 }
  0xc4   :  { %v272_v57 = vadd.f32 %v195_v56, %v62_v39  ;;  %v276_v8 = vadd.f32 %v219_v58, %v74_v41 }
  0xc6   :  { %317 = vperm.xlu2 %425, %v272_v57  }
  0xc7   :  { %v171_v59 = vpop.permute.xlu0 %170 }
  0xc8   :  { %v268_v60 = vadd.f32 %v171_v59, %v50_v31 }
  0xca   :  { %305 = vperm.xlu1 %424, %v268_v60  }
  0xcb   :  { %v207_v61 = vpop.permute.xlu1 %206  ;;  %v231_v1 = vpop.permute.xlu2 %230 }
  0xcc   :  { %v274_v63 = vadd.f32 %v207_v61, %v68_v18  ;;  %v278_v2 = vadd.f32 %v231_v1, %v80_v47 }
  0xce   :  { %326 = vperm.xlu2 %425, %v275_v62   ;;  %323 = vperm.xlu0 %426, %v274_v63  }
  0xcf   :  { %v243_v9 = vpop.permute.xlu0 %242 }
  0xd0   :  { %v280_v10 = vadd.f32 %v243_v9, %v86_v40 }
  0xd2   :  { %314 = vperm.xlu1 %424, %v271_v0  }
  0xd6   :  { %335 = vperm.xlu2 %425, %v278_v2  }
  0xda   :  { %320 = vperm.xlu1 %424, %v273_v3   ;;  %v249_v4 = vpop.permute.xlu2 %248 }
  0xdb   :  { %v281_v5 = vadd.f32 %v249_v4, %v89_v51  ;;  %v225_v6 = vpop.permute.xlu1 %224 }
  0xdc   :  { %v277_v7 = vadd.f32 %v225_v6, %v77_v37 }
  0xde   :  { %344 = vperm.xlu2 %425, %v281_v5   ;;  %332 = vperm.xlu0 %426, %v277_v7  }
  0xe2   :  { %329 = vperm.xlu1 %424, %v276_v8  }
  0xe3   :  { %v237_v11 = vpop.permute.xlu1 %236 }
  0xe4   :  { %v279_v12 = vadd.f32 %v237_v11, %v83_v44 }
  0xe6   :  { %341 = vperm.xlu0 %426, %v280_v10  }
  0xea   :  { %338 = vperm.xlu1 %424, %v279_v12  }
 0x100   :  { %v303_v14 = vpop.permute.xlu2 %302 }
 0x101   :  { %v350_v19 = vperm.slane %v303_v14, %v349_v16 }
 0x118   :  { %v312_v22 = vpop.permute.xlu2 %311 }
 0x119   :  { %v356_v18 = vperm.slane %v312_v22, %v347_v13 }
 0x120   :  { %v318_v24 = vpop.permute.xlu2 %317  ;;  %v309_v25 = vpop.permute.xlu0 %308 }
 0x121   :  { %v354_v27 = vperm.slane %v309_v25, %v349_v16  ;;  %v359_v39 = vperm.slane %v318_v24, %v347_v13 }
 0x128   :  { %v300_v17 = vpop.permute.xlu1 %299  ;;  %v327_v29 = vpop.permute.xlu2 %326 }
 0x129   :  { %v348_v21 = vperm.slane %v300_v17, %v347_v13  ;;  %v363_v31 = vperm.slane %v327_v29, %v349_v16 }
 0x12b   :  { %v352_v23 = vsel %vm351_vm1, %v350_v19, %v348_v21 }
 0x12c   :  { %383 = vst.msk [vmem:[#allocation5] sm:$0x1] %vm382_vm2, %v352_v23 }
 0x130   :  { %v336_v37 = vpop.permute.xlu2 %335 }
 0x131   :  { %v368_v52 = vperm.slane %v336_v37, %v347_v13 }
 0x138   :  { %v345_v45 = vpop.permute.xlu2 %344 }
 0x139   :  { %v372_v48 = vperm.slane %v345_v45, %v349_v16 }
 0x13c   :  { %v306_v26 = vpop.permute.xlu1 %305 }
 0x13d   :  { %v353_v28 = vperm.slane %v306_v26, %v347_v13 }
 0x13f   :  { %v355_v15 = vsel %vm351_vm1, %v354_v27, %v353_v28 }
 0x140   :  { %384 = vst.msk [vmem:[#allocation5 + $0x1] sm:$0x1] %vm382_vm2, %v355_v15  ;;  %v324_v30 = vpop.permute.xlu0 %323 }
 0x141   :  { %v362_v32 = vperm.slane %v324_v30, %v347_v13 }
 0x143   :  { %v364_v33 = vsel %vm351_vm1, %v363_v31, %v362_v32 }
 0x144   :  { %387 = vst.msk [vmem:[#allocation5 + $0x4] sm:$0x1] %vm382_vm2, %v364_v33  ;;  %v315_v34 = vpop.permute.xlu1 %314 }
 0x145   :  { %v357_v35 = vperm.slane %v315_v34, %v349_v16 }
 0x147   :  { %v358_v36 = vsel %vm351_vm1, %v357_v35, %v356_v18 }
 0x148   :  { %385 = vst.msk [vmem:[#allocation5 + $0x2] sm:$0x1] %vm382_vm2, %v358_v36 }
 0x14c   :  { %v321_v38 = vpop.permute.xlu1 %320 }
 0x14d   :  { %v360_v40 = vperm.slane %v321_v38, %v349_v16 }
 0x14f   :  { %v361_v41 = vsel %vm351_vm1, %v360_v40, %v359_v39 }
 0x150   :  { %386 = vst.msk [vmem:[#allocation5 + $0x3] sm:$0x1] %vm382_vm2, %v361_v41  ;;  %v333_v42 = vpop.permute.xlu0 %332 }
 0x151   :  { %v366_v20 = vperm.slane %v333_v42, %v349_v16 }
 0x154   :  { %v330_v43 = vpop.permute.xlu1 %329 }
 0x155   :  { %v365_v44 = vperm.slane %v330_v43, %v347_v13 }
 0x157   :  { %v367_v46 = vsel %vm351_vm1, %v366_v20, %v365_v44 }
 0x158   :  { %388 = vst.msk [vmem:[#allocation5 + $0x5] sm:$0x1] %vm382_vm2, %v367_v46  ;;  %v342_v47 = vpop.permute.xlu0 %341 }
 0x159   :  { %v371_v49 = vperm.slane %v342_v47, %v347_v13 }
 0x15b   :  { %v373_v50 = vsel %vm351_vm1, %v372_v48, %v371_v49 }
 0x15c   :  { %390 = vst.msk [vmem:[#allocation5 + $0x7] sm:$0x1] %vm382_vm2, %v373_v50  ;;  %v339_v51 = vpop.permute.xlu1 %338 }
 0x15d   :  { %v369_v53 = vperm.slane %v339_v51, %v349_v16 }
 0x15f   :  { %v370_v54 = vsel %vm351_vm1, %v369_v53, %v368_v52 }
 0x160   :  { %389 = vst.msk [vmem:[#allocation5 + $0x6] sm:$0x1] %vm382_vm2, %v370_v54 }
 0x161   :  { %403 = dma.vmem_to_hbm [thread:$0]  %s396_s13, 128, %s398_s16, [#allocation4], %s484_s17, %s484_s17, %s485_s18  }
 0x162   :  { %477 = dma.done.wait [#allocation4], 128  }
 0x163   :  { %478 = vsyncadd [#allocation4], 4294967168 }
 0x164   :  { %408 = vsyncpa [#allocation3], 1 }
 0x165   :  { %409 = vsyncpa [#allocation4], 1 }

</bundles_post_ra>
